<compile_context>
chip_gen: v7x
topology: tpu7x:2x2x1
jax: 0.10.0
libtpu: 0.0.40
codegen_flags: <defaults>
</compile_context>

<pallas_src>
import math

import jax
import jax.numpy as jnp
import numpy as np
from jax.experimental import pallas as pl
from jax.experimental.pallas import tpu as pltpu


LANE = 128                     # pad every feature dim to a multiple of 128
SUBLANE_BF16 = 16              # bf16 packs 2 rows / sublane -> batch tile multiple of 16
COMPUTE_DTYPE = jnp.bfloat16   # matmul input dtype (f32 accumulation on the MXU)


def _round_up(x, m):
    return (x + m - 1) // m * m


# ----------------------------- Pallas kernel ------------------------------ #

def _make_emlp_kernel(activations, num_layers, compute_dtype):
    """Kernel ref order: (x, w0, b0, w1, b1, ..., w_{L-1}, b_{L-1}, out).

    Matmuls run in `compute_dtype` with f32 accumulation (MXU); bias add and
    activations stay in f32 (VPU/EUP) so the elementwise path is v5e-safe.
    """

    def kernel(x_ref, *refs):
        out_ref = refs[-1]
        wb_refs = refs[:-1]

        h = x_ref[...]                                    # (TB, in_pad) compute_dtype
        for i in range(num_layers):
            w = wb_refs[2 * i][...]                       # (in_pad, out_pad) compute_dtype
            b = wb_refs[2 * i + 1][...]                   # (1, out_pad)      f32
            acc = jnp.dot(h, w, preferred_element_type=jnp.float32) + b
            if i != num_layers - 1:
                acc = activations[i](acc)                 # elementwise in f32
                h = acc.astype(compute_dtype)             # back to bf16 for next MXU op
            else:
                h = acc
        out_ref[...] = h.astype(out_ref.dtype)            # lane-dense (out_pad = 128k) store

    return kernel


# ------------------------------ host wrapper ------------------------------ #

def pad_params(params, lane=LANE, compute_dtype=COMPUTE_DTYPE):
    """Zero-pad every (W, b) so feature dims are multiples of `lane`.

    Zero padding is exact: padded input columns hit zero weight rows and padded
    bias entries are zero, so padded lanes never contaminate true outputs.
    Weights are pre-stored in `compute_dtype` (halves HBM->VMEM traffic);
    biases stay f32.
    """
    padded = []
    for w, b in params:
        fi, fo = w.shape
        fi_p, fo_p = _round_up(fi, lane), _round_up(fo, lane)
        w_p = jnp.zeros((fi_p, fo_p), compute_dtype).at[:fi, :fo].set(
            w.astype(compute_dtype))
        b_p = jnp.zeros((1, fo_p), jnp.float32).at[:, :fo].set(b)
        padded.append((w_p, b_p))
    return padded


def _pick_batch_tile(batch, tb):
    """Batch tile: multiple of 16 (bf16 sublane packing), capped at 512.

    Small batches -> one grid step (no per-step overhead); large batches get
    tiled + pipelined and sharded over cores via the "parallel" grid axis.
    """
    if tb is not None:
        return _round_up(tb, SUBLANE_BF16)
    return min(512, _round_up(max(batch, 1), SUBLANE_BF16))


def emlp_forward(x, padded_params, activations, true_out_dim, *, tb=None,
                 compute_dtype=COMPUTE_DTYPE):
    """Run the padded EmlpNet forward as one gridded Pallas TPU kernel.

    x:             (batch, NVarsInput) float32
    padded_params: list of (W_pad, b_pad) from pad_params()
    Returns (batch, true_out_dim) float32.
    """
    num_layers = len(padded_params)
    batch, in_true = x.shape
    in_pad = padded_params[0][0].shape[0]
    out_pad = padded_params[-1][0].shape[1]

    tb = _pick_batch_tile(batch, tb)
    b_pad = _round_up(max(batch, 1), tb)

    # Pad batch + input features and pre-cast to the compute dtype (bf16).
    x_p = jnp.zeros((b_pad, in_pad), compute_dtype)
    x_p = x_p.at[:batch, :in_true].set(x.astype(compute_dtype))

    flat = []
    # x / out are tiled over the batch; weights & biases use a constant block
    # index so they are fetched once and stay resident in VMEM across steps.
    in_specs = [pl.BlockSpec((tb, in_pad), lambda i: (i, 0))]
    for w, b in padded_params:
        flat.extend([w, b])
        in_specs.append(pl.BlockSpec(w.shape, lambda i: (0, 0)))
        in_specs.append(pl.BlockSpec(b.shape, lambda i: (0, 0)))
    out_specs = pl.BlockSpec((tb, out_pad), lambda i: (i, 0))

    flops = 2 * b_pad * sum(w.shape[0] * w.shape[1] for w, _ in padded_params)
    transcendentals = b_pad * sum(w.shape[1] for w, _ in padded_params[:-1])
    bytes_accessed = (x_p.size * x_p.dtype.itemsize
                      + sum(a.size * a.dtype.itemsize for a in flat)
                      + b_pad * out_pad * 4)

    kernel = _make_emlp_kernel(activations, num_layers, compute_dtype)

    out_p = pl.pallas_call(
        kernel,
        out_shape=jax.ShapeDtypeStruct((b_pad, out_pad), jnp.float32),
        grid=(b_pad // tb,),
        in_specs=in_specs,
        out_specs=out_specs,
        compiler_params=pltpu.CompilerParams(
            dimension_semantics=("parallel",)),   # batch tiles -> both v7x cores
        cost_estimate=pl.CostEstimate(
            flops=flops, transcendentals=transcendentals,
            bytes_accessed=bytes_accessed),
    )(x_p, *flat)

    return out_p[:batch, :true_out_dim]


# ------------------------- parameter construction -------------------------- #

def init_emlp_params(key, n_vars_input, model_topology, n_vars_output):
    """Deterministic init mirroring nn.Linear defaults (U(-1/sqrt(fan_in), +))."""
    dims = [n_vars_input] + list(model_topology) + [n_vars_output]
    params = []
    for i in range(len(dims) - 1):
        fan_in, fan_out = dims[i], dims[i + 1]
        bound = 1.0 / math.sqrt(fan_in)
        key, kw, kb = jax.random.split(key, 3)
        w = jax.random.uniform(kw, (fan_in, fan_out), jnp.float32, -bound, bound)
        b = jax.random.uniform(kb, (1, fan_out), jnp.float32, -bound, bound)
        params.append((w, b))
    return params


def emlp_reference(x, params, activations, compute_dtype=jnp.float32):
    """Pure-JAX reference (semantics of EmlpNet.forward) with optional bf16 matmuls."""
    h = x
    num_layers = len(params)
    for i, (w, b) in enumerate(params):
        acc = jnp.dot(h.astype(compute_dtype), w.astype(compute_dtype),
                      preferred_element_type=jnp.float32) + b
        if i != num_layers - 1:
            acc = activations[i](acc)
        h = acc
    return h


# ---------------------------------- main ----------------------------------- #

if __name__ == "__main__":
    # Shapes consistent with the module:
    #   NVarsInput=32, ModelTopology=[64, 32], NVarsOutput=16, batch=64
    batch = 64
    n_vars_input = 32
    model_topology = np.array([64, 32])
    n_vars_output = 16
    TB = 32   # explicit batch tile (multiple of 16) -> grid=(2,) to exercise tiling

    # ActivateFunctionList (one per hidden layer): tanh, relu
    activations = [jnp.tanh, lambda v: jnp.maximum(v, 0.0)]

    key = jax.random.PRNGKey(0)
    key, kx = jax.random.split(key)
    x = jax.random.normal(kx, (batch, n_vars_input), jnp.float32)

    params = init_emlp_params(key, n_vars_input, model_topology, n_vars_output)
    padded_params = pad_params(params)

    # Build the jitted forward once (activations / shapes / tile are static).
    forward_fn = jax.jit(
        lambda xx, pp: emlp_forward(xx, pp, activations, n_vars_output, tb=TB))

    out = jax.block_until_ready(forward_fn(x, padded_params))
    assert out.shape == (batch, n_vars_output)

    # Also exercise the adaptive-tile (single grid step) path.
    forward_fn_auto = jax.jit(
        lambda xx, pp: emlp_forward(xx, pp, activations, n_vars_output))
    out_auto = jax.block_until_ready(forward_fn_auto(x, padded_params))

    # Tight check vs. a pure-JAX reference with the same bf16 matmul / f32
    # activation recipe (verifies the kernel itself).
    ref_matched = emlp_reference(x, params, activations, compute_dtype=COMPUTE_DTYPE)
    np.testing.assert_allclose(np.asarray(out), np.asarray(ref_matched),
                               rtol=1e-4, atol=1e-4)
    np.testing.assert_allclose(np.asarray(out_auto), np.asarray(ref_matched),
                               rtol=1e-4, atol=1e-4)

    # Loose check vs. the full-f32 torch-semantics reference (bf16 rounding only).
    ref_f32 = emlp_reference(x, params, activations, compute_dtype=jnp.float32)
    np.testing.assert_allclose(np.asarray(out), np.asarray(ref_f32),
                               rtol=5e-2, atol=5e-2)

    print("KERNEL_OK")
</pallas_src>

<mosaic_0001>
module attributes {stable_mosaic.version = 11 : i64} {
  func.func @kernel(%arg0: i32, %arg1: memref<32x128xbf16, #tpu.memory_space<vmem>>, %arg2: memref<128x128xbf16, #tpu.memory_space<vmem>>, %arg3: memref<1x128xf32, #tpu.memory_space<vmem>>, %arg4: memref<128x128xbf16, #tpu.memory_space<vmem>>, %arg5: memref<1x128xf32, #tpu.memory_space<vmem>>, %arg6: memref<128x128xbf16, #tpu.memory_space<vmem>>, %arg7: memref<1x128xf32, #tpu.memory_space<vmem>>, %arg8: memref<32x128xf32, #tpu.memory_space<vmem>>) attributes {dimension_semantics = [#tpu.dimension_semantics<parallel>], iteration_bounds = array<i64: 2>, scalar_prefetch = 0 : i64, scratch_operands = 0 : i64, tpu.core_type = #tpu.core_type<tc>, window_params = [{transform_indices = @transform_0, window_bounds = array<i64: 32, 128>}, {pipeline_mode = #tpu.pipeline_mode<synchronous>, transform_indices = @transform_1, window_bounds = array<i64: 128, 128>}, {pipeline_mode = #tpu.pipeline_mode<synchronous>, transform_indices = @transform_2, window_bounds = array<i64: 1, 128>}, {pipeline_mode = #tpu.pipeline_mode<synchronous>, transform_indices = @transform_3, window_bounds = array<i64: 128, 128>}, {pipeline_mode = #tpu.pipeline_mode<synchronous>, transform_indices = @transform_4, window_bounds = array<i64: 1, 128>}, {pipeline_mode = #tpu.pipeline_mode<synchronous>, transform_indices = @transform_5, window_bounds = array<i64: 128, 128>}, {pipeline_mode = #tpu.pipeline_mode<synchronous>, transform_indices = @transform_6, window_bounds = array<i64: 1, 128>}, {transform_indices = @transform_7, window_bounds = array<i64: 32, 128>}]} {
    %c0 = arith.constant 0 : index
    %c0_0 = arith.constant 0 : index
    %0 = vector.load %arg1[%c0, %c0_0] : memref<32x128xbf16, #tpu.memory_space<vmem>>, vector<32x128xbf16>
    %c0_1 = arith.constant 0 : index
    %c0_2 = arith.constant 0 : index
    %1 = vector.load %arg2[%c0_1, %c0_2] : memref<128x128xbf16, #tpu.memory_space<vmem>>, vector<128x128xbf16>
    %c0_3 = arith.constant 0 : index
    %c0_4 = arith.constant 0 : index
    %2 = vector.load %arg3[%c0_3, %c0_4] : memref<1x128xf32, #tpu.memory_space<vmem>>, vector<1x128xf32>
    %cst = arith.constant dense<0.000000e+00> : vector<32x128xf32>
    %3 = tpu.matmul %0, %1, %cst {dimension_numbers = #tpu.dot_dimension_numbers<[1], [0], [0], [1], [0, 0, 1, 1], [], []>} : vector<32x128xbf16>, vector<128x128xbf16>, vector<32x128xf32> -> vector<32x128xf32>
    %4 = vector.broadcast %2 : vector<1x128xf32> to vector<32x128xf32>
    %5 = arith.addf %3, %4 : vector<32x128xf32>
    %6 = math.tanh %5 : vector<32x128xf32>
    %7 = arith.truncf %6 : vector<32x128xf32> to vector<32x128xbf16>
    %c0_5 = arith.constant 0 : index
    %c0_6 = arith.constant 0 : index
    %8 = vector.load %arg4[%c0_5, %c0_6] : memref<128x128xbf16, #tpu.memory_space<vmem>>, vector<128x128xbf16>
    %c0_7 = arith.constant 0 : index
    %c0_8 = arith.constant 0 : index
    %9 = vector.load %arg5[%c0_7, %c0_8] : memref<1x128xf32, #tpu.memory_space<vmem>>, vector<1x128xf32>
    %cst_9 = arith.constant dense<0.000000e+00> : vector<32x128xf32>
    %10 = tpu.matmul %7, %8, %cst_9 {dimension_numbers = #tpu.dot_dimension_numbers<[1], [0], [0], [1], [0, 0, 1, 1], [], []>} : vector<32x128xbf16>, vector<128x128xbf16>, vector<32x128xf32> -> vector<32x128xf32>
    %11 = vector.broadcast %9 : vector<1x128xf32> to vector<32x128xf32>
    %12 = arith.addf %10, %11 : vector<32x128xf32>
    %cst_10 = arith.constant 0.000000e+00 : f32
    %13 = vector.broadcast %cst_10 : f32 to vector<32x128xf32>
    %14 = arith.maximumf %12, %13 : vector<32x128xf32>
    %15 = arith.truncf %14 : vector<32x128xf32> to vector<32x128xbf16>
    %c0_11 = arith.constant 0 : index
    %c0_12 = arith.constant 0 : index
    %16 = vector.load %arg6[%c0_11, %c0_12] : memref<128x128xbf16, #tpu.memory_space<vmem>>, vector<128x128xbf16>
    %c0_13 = arith.constant 0 : index
    %c0_14 = arith.constant 0 : index
    %17 = vector.load %arg7[%c0_13, %c0_14] : memref<1x128xf32, #tpu.memory_space<vmem>>, vector<1x128xf32>
    %cst_15 = arith.constant dense<0.000000e+00> : vector<32x128xf32>
    %18 = tpu.matmul %15, %16, %cst_15 {dimension_numbers = #tpu.dot_dimension_numbers<[1], [0], [0], [1], [0, 0, 1, 1], [], []>} : vector<32x128xbf16>, vector<128x128xbf16>, vector<32x128xf32> -> vector<32x128xf32>
    %19 = vector.broadcast %17 : vector<1x128xf32> to vector<32x128xf32>
    %20 = arith.addf %18, %19 : vector<32x128xf32>
    %c0_16 = arith.constant 0 : index
    %c0_17 = arith.constant 0 : index
    %21 = vector.load %arg8[%c0_16, %c0_17] : memref<32x128xf32, #tpu.memory_space<vmem>>, vector<32x128xf32>
    tpu.vector_store %arg8[%c0_16, %c0_17], %20 {strides = array<i32>} : memref<32x128xf32, #tpu.memory_space<vmem>>, vector<32x128xf32>,
    return
  }
  func.func @transform_0(%arg0: i32) -> (i32, i32) {
    %c0_i32 = arith.constant 0 : i32
    %c0_i32_0 = arith.constant 0 : i32
    return %arg0, %c0_i32 : i32, i32
  }
  func.func @transform_1(%arg0: i32) -> (i32, i32) {
    %c0_i32 = arith.constant 0 : i32
    %c0_i32_0 = arith.constant 0 : i32
    %c0_i32_1 = arith.constant 0 : i32
    return %c0_i32, %c0_i32_0 : i32, i32
  }
  func.func @transform_2(%arg0: i32) -> (i32, i32) {
    %c0_i32 = arith.constant 0 : i32
    %c0_i32_0 = arith.constant 0 : i32
    %c0_i32_1 = arith.constant 0 : i32
    return %c0_i32, %c0_i32_0 : i32, i32
  }
  func.func @transform_3(%arg0: i32) -> (i32, i32) {
    %c0_i32 = arith.constant 0 : i32
    %c0_i32_0 = arith.constant 0 : i32
    %c0_i32_1 = arith.constant 0 : i32
    return %c0_i32, %c0_i32_0 : i32, i32
  }
  func.func @transform_4(%arg0: i32) -> (i32, i32) {
    %c0_i32 = arith.constant 0 : i32
    %c0_i32_0 = arith.constant 0 : i32
    %c0_i32_1 = arith.constant 0 : i32
    return %c0_i32, %c0_i32_0 : i32, i32
  }
  func.func @transform_5(%arg0: i32) -> (i32, i32) {
    %c0_i32 = arith.constant 0 : i32
    %c0_i32_0 = arith.constant 0 : i32
    %c0_i32_1 = arith.constant 0 : i32
    return %c0_i32, %c0_i32_0 : i32, i32
  }
  func.func @transform_6(%arg0: i32) -> (i32, i32) {
    %c0_i32 = arith.constant 0 : i32
    %c0_i32_0 = arith.constant 0 : i32
    %c0_i32_1 = arith.constant 0 : i32
    return %c0_i32, %c0_i32_0 : i32, i32
  }
  func.func @transform_7(%arg0: i32) -> (i32, i32) {
    %c0_i32 = arith.constant 0 : i32
    %c0_i32_0 = arith.constant 0 : i32
    return %arg0, %c0_i32 : i32, i32
  }
}

</mosaic_0001>

<bundles_post_ra>
// kernel: _lambda_.1
= control target key start
LH: loop header
LB: loop body
LE: loop exit
PB: predicated region body
PF: predicated region fallthrough
CT: control target
= control target key end

     0   :  { %s951_s24 = smov 0   ;;  %s1053_s0 = inlined_call_operand.vmem [shape: bf16[64,128], index: 0, kind: input, shape index: {}]   ;;  %s1054_s1 = inlined_call_operand.vmem [shape: bf16[128,128], index: 1, kind: input, shape index: {}]   ;;  %s1055_s2 = inlined_call_operand.vmem [shape: f32[1,128], index: 2, kind: input, shape index: {}]   ;;  %s1056_s3 = inlined_call_operand.vmem [shape: bf16[128,128], index: 3, kind: input, shape index: {}]   ;;  %s1057_s4 = inlined_call_operand.vmem [shape: f32[1,128], index: 4, kind: input, shape index: {}]   ;;  %s1058_s5 = inlined_call_operand.vmem [shape: bf16[128,128], index: 5, kind: input, shape index: {}]   ;;  %s1059_s6 = inlined_call_operand.vmem [shape: f32[1,128], index: 6, kind: input, shape index: {}]   ;;  %s1060_s7 = inlined_call_operand.vmem [shape: f32[64,128], index: 7, kind: output, shape index: {}]  }
   0x1 LB: > { %s731_s25 = sadd.s32 4294967295, %s909_s24   ;;  %p735_p0 = scmp.ge.s32.totalorder %s909_s24, 1  ;;  %s909_s24 = sphi %s951_s24, %s17_s24  }
   0x2   : > { %p238_p1 = scmp.lt.s32.totalorder %s909_s24, 3 }
   0x4   : > { %p239_p2 = pnand %p735_p0, %p238_p1 }
   0x5   : > { %v869_v0 = vld [vmem:[%s1054_s1] sm:$0xff] (!%p239_p2)   ;;  %s736_s28 = sshll.u32 (!%p239_p2), %s731_s25, 2  ;;  %v870_v1 = vld [vmem:[%s1054_s1 + $0x8] sm:$0xff] (!%p239_p2)   ;;  %v871_v2 = vld [vmem:[%s1054_s1 + $0x10] sm:$0xff] (!%p239_p2)  }
   0x6   : > { %242 = sbr.rel (%p239_p2) target bundleno = 709 (0x2c5), region = 48  ;;  %p271_p3 = scmp.lt.s32.totalorder (!%p239_p2), %s736_s28, 7  ;;  %801 = vmatprep.subr.bf16.mxu0 (!%p239_p2), %v869_v0  ;;  %v872_v3 = vld [vmem:[%s1054_s1 + $0x18] sm:$0xff] (!%p239_p2)   ;;  %v873_v5 = vld [vmem:[%s1054_s1 + $0x20] sm:$0xff] (!%p239_p2)   ;;  %v880_v7 = vld [vmem:[%s1056_s3 + $0x8] sm:$0xff] (!%p239_p2)  }
   0x7   : > { %802 = vmatpush3.bf16.msra.mxu0 (!%p239_p2), %v869_v0  ;;  %v879_v6 = vld [vmem:[%s1056_s3] sm:$0xff] (!%p239_p2)   ;;  %v881_v8 = vld [vmem:[%s1056_s3 + $0x10] sm:$0xff] (!%p239_p2)   ;;  %v874_v9 = vld [vmem:[%s1054_s1 + $0x28] sm:$0xff] (!%p239_p2)  }
   0x8   : > { %803 = vmatprep.subr.bf16.mxu0 (!%p239_p2), %v870_v1  ;;  %821 = vmatprep.subr.bf16.mxu1 (!%p239_p2), %v879_v6  ;;  %v875_v10 = vld [vmem:[%s1054_s1 + $0x30] sm:$0xff] (!%p239_p2)   ;;  %v876_v11 = vld [vmem:[%s1054_s1 + $0x38] sm:$0xff] (!%p239_p2)   ;;  %v883_v14 = vld [vmem:[%s1056_s3 + $0x20] sm:$0xff] (!%p239_p2)  }
   0x9   : > { %822 = vmatpush3.bf16.msra.mxu1 (!%p239_p2), %v879_v6  ;;  %v882_v13 = vld [vmem:[%s1056_s3 + $0x18] sm:$0xff] (!%p239_p2)   ;;  %v884_v15 = vld [vmem:[%s1056_s3 + $0x28] sm:$0xff] (!%p239_p2)   ;;  %v885_v16 = vld [vmem:[%s1056_s3 + $0x30] sm:$0xff] (!%p239_p2)  }
   0xa   : > { %823 = vmatprep.subr.bf16.mxu1 (!%p239_p2), %v880_v7  ;;  %v886_v17 = vld [vmem:[%s1056_s3 + $0x38] sm:$0xff] (!%p239_p2)   ;;  %v887_v18 = vld [vmem:[%s1058_s5] sm:$0xff] (!%p239_p2)   ;;  %v888_v19 = vld [vmem:[%s1058_s5 + $0x8] sm:$0xff] (!%p239_p2)  }
   0xb   : > { %804 = vmatpush3.bf16.msra.mxu0 (!%p239_p2), %v870_v1  ;;  %v889_v20 = vld [vmem:[%s1058_s5 + $0x10] sm:$0xff] (!%p239_p2)   ;;  %v890_v21 = vld [vmem:[%s1058_s5 + $0x18] sm:$0xff] (!%p239_p2)   ;;  %v891_v22 = vld [vmem:[%s1058_s5 + $0x20] sm:$0xff] (!%p239_p2)  }
   0xc   : > { %805 = vmatprep.subr.bf16.mxu0 (!%p239_p2), %v871_v2  ;;  %v892_v23 = vld [vmem:[%s1058_s5 + $0x28] sm:$0xff] (!%p239_p2)   ;;  %v740_v24 = vld [vmem:[%s1055_s2] ss:$0 sm:$0xff] (!%p239_p2)  ;;  %v893_v39 = vld [vmem:[%s1058_s5 + $0x30] sm:$0xff] (!%p239_p2)  }
   0xd   : > { %s1062_s28 = smov (!%p271_p3, %s736_s28), 7  ;;  %824 = vmatpush3.bf16.msra.mxu1 %v880_v7  ;;  %v894_v40 = vld [vmem:[%s1058_s5 + $0x38] sm:$0xff]   ;;  %v751_v41 = vld [vmem:[%s1057_s4] ss:$0 sm:$0xff] }
   0xe   : > { %s737_s10 = sshll.u32 %s1062_s28, 2  ;;  %825 = vmatprep.subr.bf16.mxu1 %v881_v8  ;;  %s739_s18 = sshll.u32 %s1062_s28, 3  ;;  %v760_v56 = vld [vmem:[%s1059_s6] ss:$0 sm:$0xff] }
   0xf   : > { %s274_s13 = scalar_lea.vmem %s1053_s0, %s737_s10  ;;  %806 = vmatpush3.bf16.msra.mxu0 %v871_v2  ;;  %s280_s23 = scalar_lea.vmem %s1060_s7, %s739_s18 }
  0x10   : > { %v877_v4 = vld [vmem:[%s274_s13] sm:$0xff]   ;;  %807 = vmatprep.subr.bf16.mxu0 %v872_v3  ;;  %v878_v12 = vld [vmem:[%s274_s13 + $0x8] sm:$0xff]  }
  0x11   : > { %817 = vmatprep.mubr.bf16.mxu0 %v877_v4  ;;  %826 = vmatpush3.bf16.msra.mxu1 %v881_v8 }
  0x12   : > { %827 = vmatprep.subr.bf16.mxu1 %v882_v13 }
  0x13   : > { %808 = vmatpush3.bf16.msra.mxu0 %v872_v3 }
  0x14   : > { %809 = vmatprep.subr.bf16.mxu0 %v873_v5 }
  0x15   : > { %828 = vmatpush3.bf16.msra.mxu1 %v882_v13 }
  0x16   : > { %829 = vmatprep.subr.bf16.mxu1 %v883_v14 }
  0x17   : > { %810 = vmatpush3.bf16.msra.mxu0 %v873_v5 }
  0x18   : > { %811 = vmatprep.subr.bf16.mxu0 %v874_v9 }
  0x19   : > { %830 = vmatpush3.bf16.msra.mxu1 %v883_v14 }
  0x1a   : > { %831 = vmatprep.subr.bf16.mxu1 %v884_v15 }
  0x1b   : > { %812 = vmatpush3.bf16.msra.mxu0 %v874_v9 }
  0x1c   : > { %813 = vmatprep.subr.bf16.mxu0 %v875_v10 }
  0x1d   : > { %832 = vmatpush3.bf16.msra.mxu1 %v884_v15 }
  0x1e   : > { %833 = vmatprep.subr.bf16.mxu1 %v885_v16 }
  0x1f   : > { %814 = vmatpush3.bf16.msra.mxu0 %v875_v10 }
  0x20   : > { %815 = vmatprep.subr.bf16.mxu0 %v876_v11 }
  0x21   : > { %834 = vmatpush3.bf16.msra.mxu1 %v885_v16 }
  0x22   : > { %835 = vmatprep.subr.bf16.mxu1 %v886_v17 }
  0x23   : > { %816 = vmatpush3.bf16.msra.mxu0 %v876_v11 }
  0x24   : > { %841 = vmatprep.subr.bf16.mxu0 %v887_v18 }
  0x25   : > { %836 = vmatpush3.bf16.msra.mxu1 %v886_v17 }
  0x26   : > { %818 = vmatmul.mubr.bf16.vlgmr.msra.gmra.mrb[0].mxu0 %v878_v12 }
  0x27   : > { %842 = vmatpush3.bf16.msra.mxu0 %v887_v18 }
  0x28   : > { %843 = vmatprep.subr.bf16.mxu0 %v888_v19 }
  0x2b   : > { %844 = vmatpush3.bf16.msra.mxu0 %v888_v19 }
  0x2c   : > { %845 = vmatprep.subr.bf16.mxu0 %v889_v20 }
  0x2f   : > { %846 = vmatpush3.bf16.msra.mxu0 %v889_v20 }
  0x30   : > { %847 = vmatprep.subr.bf16.mxu0 %v890_v21 }
  0x33   : > { %848 = vmatpush3.bf16.msra.mxu0 %v890_v21 }
  0x34   : > { %849 = vmatprep.subr.bf16.mxu0 %v891_v22 }
  0x37   : > { %850 = vmatpush3.bf16.msra.mxu0 %v891_v22 }
  0x38   : > { %851 = vmatprep.subr.bf16.mxu0 %v892_v23 }
  0x3b   : > { %852 = vmatpush3.bf16.msra.mxu0 %v892_v23 }
  0x3c   : > { %853 = vmatprep.subr.bf16.mxu0 %v893_v39 }
  0x3f   : > { %854 = vmatpush3.bf16.msra.mxu0 %v893_v39 }
  0x40   : > { %855 = vmatprep.subr.bf16.mxu0 %v894_v40 }
  0x43   : > { %856 = vmatpush3.bf16.msra.mxu0 %v894_v40 }
  0xf9   : > { %v819_v25 = vpop.f32.mrb[0].mxu0 }
  0xfa   : > { %v413_v26 = vadd.f32 %v819_v25, %v740_v24  ;;  %v404_v27 = vpop.f32.mrb[1].mxu0 }
  0xfb   : > { %v405_v28 = vadd.f32 %v740_v24, %v404_v27  ;;  %v820_v29 = vpop.f32.mrb[2].mxu0 }
  0xfc   : > { %895 = vtanh.f32 %v413_v26  ;;  %v416_v30 = vadd.f32 %v820_v29, %v740_v24  ;;  %v407_v31 = vpop.f32.mrb[3].mxu0 }
  0xfd   : > { %897 = vtanh.f32 %v405_v28  ;;  %v408_v32 = vadd.f32 %v740_v24, %v407_v31 }
  0xfe   : > { %899 = vtanh.f32 %v416_v30 }
  0xff   : > { %901 = vtanh.f32 %v408_v32 }
 0x106   : > { %v896_v33 = vpop.eup %895 }
 0x107   : > { %v898_v34 = vpop.eup %897 }
 0x108   : > { %v900_v35 = vpop.eup %899 }
 0x109   : > { %v902_v36 = vpop.eup %901  ;;  %v424_v37 = vpack.c.bf16 %v900_v35, %v896_v33 }
 0x10a   : > { %v423_v38 = vpack.c.bf16 %v902_v36, %v898_v34 }
 0x10c   : > { %837 = vmatprep.mubr.bf16.mxu1 %v423_v38 }
 0x10d   : > { %838 = vmatmul.mubr.bf16.vlgmr.msra.gmra.mrb[0].mxu1 %v424_v37 }
 0x1e0   : > { %v839_v42 = vpop.f32.mrb[0].mxu1 }
 0x1e1   : > { %v539_v43 = vadd.f32 %v839_v42, %v751_v41  ;;  %v530_v44 = vpop.f32.mrb[1].mxu1 }
 0x1e2   : > { %v531_v45 = vadd.f32 %v751_v41, %v530_v44  ;;  %v840_v46 = vpop.f32.mrb[2].mxu1 }
 0x1e3   : > { %v542_v47 = vadd.f32 %v840_v46, %v751_v41  ;;  %v533_v48 = vpop.f32.mrb[3].mxu1  ;;  %v547_v50 = vmax.f32 %v539_v43, 0.0 }
 0x1e4   : > { %v534_v49 = vadd.f32 %v751_v41, %v533_v48  ;;  %v545_v52 = vmax.f32 %v531_v45, 0.0 }
 0x1e5   : > { %v548_v51 = vmax.f32 %v542_v47, 0.0 }
 0x1e6   : > { %v546_v53 = vmax.f32 %v534_v49, 0.0 }
 0x1e7   : > { %v550_v54 = vpack.c.bf16 %v548_v51, %v547_v50 }
 0x1e8   : > { %v549_v55 = vpack.c.bf16 %v546_v53, %v545_v52 }
 0x1ea   : > { %857 = vmatprep.mubr.bf16.mxu0 %v549_v55 }
 0x1eb   : > { %858 = vmatmul.mubr.bf16.vlgmr.msra.gmra.mrb[4].mxu0 %v550_v54 }
 0x2be   : > { %v859_v57 = vpop.f32.mrb[4].mxu0 }
 0x2bf   : > { %v656_v58 = vpop.f32.mrb[5].mxu0  ;;  %v665_v63 = vadd.f32 %v859_v57, %v760_v56 }
 0x2c0   : > { %v657_v59 = vadd.f32 %v760_v56, %v656_v58  ;;  %v860_v60 = vpop.f32.mrb[6].mxu0 }
 0x2c1   : > { %v659_v61 = vpop.f32.mrb[7].mxu0  ;;  %v668_v0 = vadd.f32 %v860_v60, %v760_v56  ;;  %673 = vst [vmem:[%s280_s23 + $0x10] sm:$0xff] %v665_v63 }
 0x2c2   : > { %671 = vst [vmem:[%s280_s23] sm:$0xff] %v657_v59  ;;  %v660_v62 = vadd.f32 %v760_v56, %v659_v61 }
 0x2c3   : > { %674 = vst [vmem:[%s280_s23 + $0x18] sm:$0xff] %v668_v0 }
 0x2c4   : > { %672 = vst [vmem:[%s280_s23 + $0x8] sm:$0xff] %v660_v62 }
 0x2c5 PF: > { %s17_s24 = sadd.s32 1, %s909_s24  }
 0x2c6   : > { %p14_p4 = scmp.ge.s32.totalorder %s17_s24, 4  }
 0x2c8   :  { %16 = sbr.rel (!%p14_p4) target bundleno = 1 (0x1), region = 78 }

</bundles_post_ra>
